<compile_context>
chip_gen: v7x
topology: tpu7x:2x2x1
jax: 0.10.0
libtpu: 0.0.40
codegen_flags: <defaults>
</compile_context>

<pallas_src>
import functools
import math

import jax
import jax.numpy as jnp
from jax.experimental import pallas as pl
from jax.experimental.pallas import tpu as pltpu

_LANE = 128
_SUBLANE = 8
_ROW_QUANTUM = 16        # multiple of both f32 (8) and bf16 (16) sublane tiles
_MAX_BLOCK_ROWS = 4096   # (4096,128) f32 block = 2 MiB per buffer
_LN2 = math.log(2.0)     # BCE(logit=0, target=0) contributed by every padded element


def _num_tensorcores():
    # TODO(synk): on v7x verify with an xprof trace that the leading "parallel"
    # axis actually shards across both TensorCores; if not, switch that axis to
    # pltpu.CORE_PARALLEL (or drive the split with pl.core_map).
    try:
        kind = jax.devices()[0].device_kind.lower()
        if "v7" in kind:
            return 2
    except Exception:
        pass
    return 1


def _bce_sum_kernel(pred_ref, true_ref, out_ref, acc_ref, *, steps_per_core):
    i = pl.program_id(1)   # reduction axis

    @pl.when(i == 0)
    def _():
        acc_ref[...] = jnp.zeros_like(acc_ref)

    x = pred_ref[...].astype(jnp.float32)
    t = true_ref[...].astype(jnp.float32)

    # Numerically stable BCE-with-logits: softplus(x) - t*x.
    # TODO(synk): diverges from PyTorch's sigmoid+BCELoss(-100 log clamp) only in
    # the f32-saturated regime (|x| >~ 17 with a mismatched target); identical otherwise.
    bce = jnp.maximum(x, 0.0) - x * t + jnp.log1p(jnp.exp(-jnp.abs(x)))

    # Fold the whole block into a single-vreg (8,128) accumulator (pure VPU adds,
    # ~1 vreg of accumulator traffic per step instead of block_rows/8).
    acc_ref[...] += jnp.sum(bce.reshape(-1, _SUBLANE, _LANE), axis=0)

    @pl.when(i == steps_per_core - 1)
    def _():
        out_ref[...] = jnp.sum(acc_ref[...]).reshape(1, 1, 1)


def focal_loss_pallas(pred_mask, true_mask, alpha=0.75, gamma=1.5):
    n = pred_mask.size
    assert true_mask.size == n

    p_flat = jnp.ravel(pred_mask)                        # logits stay in their dtype
    t_flat = jnp.ravel(true_mask).astype(jnp.bfloat16)   # 0/1 mask: exact in bf16

    ncores = _num_tensorcores()
    rows = -(-n // _LANE)

    def _round_up(a, b):
        return -(-a // b) * b

    block_rows = min(_round_up(-(-rows // ncores), _ROW_QUANTUM), _MAX_BLOCK_ROWS)
    steps_per_core = -(-rows // (block_rows * ncores))
    padded_rows = block_rows * ncores * steps_per_core
    pad_count = padded_rows * _LANE - n

    if pad_count:
        # Zero-pad both inputs to an exact block multiple; each padded element
        # contributes exactly ln(2), subtracted from the partial sum below, so
        # no validity mask is needed in the kernel's hot loop.
        p_flat = jnp.pad(p_flat, (0, pad_count))
        t_flat = jnp.pad(t_flat, (0, pad_count))

    p2 = p_flat.reshape(padded_rows, _LANE)
    t2 = t_flat.reshape(padded_rows, _LANE)

    def in_idx(c, i):
        return (c * steps_per_core + i, 0)   # exact multiple: no clamp needed

    kernel = functools.partial(_bce_sum_kernel, steps_per_core=steps_per_core)

    in_spec = pl.BlockSpec((block_rows, _LANE), in_idx)
    partials = pl.pallas_call(
        kernel,
        out_shape=jax.ShapeDtypeStruct((ncores, 1, 1), jnp.float32),
        grid_spec=pltpu.PrefetchScalarGridSpec(
            num_scalar_prefetch=0,
            grid=(ncores, steps_per_core),
            in_specs=[in_spec, in_spec],
            out_specs=pl.BlockSpec((1, 1, 1), lambda c, i: (c, 0, 0)),
            scratch_shapes=[pltpu.VMEM((_SUBLANE, _LANE), jnp.float32)],
        ),
        compiler_params=pltpu.CompilerParams(
            dimension_semantics=("parallel", "arbitrary")),
    )(p2, t2)

    # Combine per-core partial sums, remove the known pad contribution, and apply
    # the scalar focal transform (trivial scalar math, done in the wrapper).
    bce_sum = jnp.sum(partials) - jnp.float32(pad_count * _LN2)
    bce_mean = bce_sum / jnp.float32(n)
    bce_exp = jnp.exp(-bce_mean)
    return jnp.float32(alpha) * (1.0 - bce_exp) ** jnp.float32(gamma) * bce_mean


def focal_loss_ref(pred_mask, true_mask, alpha=0.75, gamma=1.5):
    # Faithful PyTorch semantics: sigmoid -> BCE with log clamp at -100 -> mean -> focal.
    p = jax.nn.sigmoid(jnp.ravel(pred_mask).astype(jnp.float32))
    t = jnp.ravel(true_mask).astype(jnp.float32)
    log_p = jnp.maximum(jnp.log(p), -100.0)
    log_1mp = jnp.maximum(jnp.log(1.0 - p), -100.0)
    bce = jnp.mean(-(t * log_p + (1.0 - t) * log_1mp))
    bce_exp = jnp.exp(-bce)
    return alpha * (1.0 - bce_exp) ** gamma * bce


if __name__ == "__main__":
    key = jax.random.PRNGKey(0)
    k1, k2 = jax.random.split(key)
    # Small NCHW-shaped logits and binary ground-truth mask.
    pred = jax.random.normal(k1, (2, 4, 16, 16), dtype=jnp.float32)
    true = (jax.random.uniform(k2, (2, 4, 16, 16)) > 0.5).astype(jnp.float32)

    out = focal_loss_pallas(pred, true)
    out = jax.block_until_ready(out)

    ref = focal_loss_ref(pred, true)
    assert jnp.allclose(out, ref, rtol=1e-5, atol=1e-6), (out, ref)
    print("KERNEL_OK")
</pallas_src>

<mosaic_0001>
module attributes {stable_mosaic.version = 11 : i64} {
  func.func @_bce_sum_kernel(%arg0: i32, %arg1: i32, %arg2: memref<16x128xf32, #tpu.memory_space<vmem>>, %arg3: memref<16x128xbf16, #tpu.memory_space<vmem>>, %arg4: memref<1x1x1xf32, #tpu.memory_space<vmem>>, %arg5: memref<8x128xf32, #tpu.memory_space<vmem>>) attributes {dimension_semantics = [#tpu.dimension_semantics<parallel>, #tpu.dimension_semantics<arbitrary>], iteration_bounds = array<i64: 1, 1>, scalar_prefetch = 0 : i64, scratch_operands = 1 : i64, tpu.core_type = #tpu.core_type<tc>, window_params = [{transform_indices = @transform_0, window_bounds = array<i64: 16, 128>}, {transform_indices = @transform_1, window_bounds = array<i64: 16, 128>}, {transform_indices = @transform_2, window_bounds = array<i64: 1, 1, 1>}]} {
    %c0_i32 = arith.constant 0 : i32
    %0 = arith.cmpi eq, %arg1, %c0_i32 : i32
    %1 = arith.extui %0 : i1 to i32
    %c0_i32_0 = arith.constant 0 : i32
    %2 = arith.cmpi ne, %1, %c0_i32_0 : i32
    scf.if %2 {
      %cst_12 = arith.constant 0.000000e+00 : f32
      %24 = vector.broadcast %cst_12 : f32 to vector<8x128xf32>
      %c0_13 = arith.constant 0 : index
      %c0_14 = arith.constant 0 : index
      %25 = vector.load %arg5[%c0_13, %c0_14] : memref<8x128xf32, #tpu.memory_space<vmem>>, vector<8x128xf32>
      tpu.vector_store %arg5[%c0_13, %c0_14], %24 {strides = array<i32>} : memref<8x128xf32, #tpu.memory_space<vmem>>, vector<8x128xf32>,
    } else {
    }
    %c0 = arith.constant 0 : index
    %c0_1 = arith.constant 0 : index
    %3 = vector.load %arg2[%c0, %c0_1] : memref<16x128xf32, #tpu.memory_space<vmem>>, vector<16x128xf32>
    %c0_2 = arith.constant 0 : index
    %c0_3 = arith.constant 0 : index
    %4 = vector.load %arg3[%c0_2, %c0_3] : memref<16x128xbf16, #tpu.memory_space<vmem>>, vector<16x128xbf16>
    %5 = arith.extf %4 : vector<16x128xbf16> to vector<16x128xf32>
    %cst = arith.constant 0.000000e+00 : f32
    %6 = vector.broadcast %cst : f32 to vector<16x128xf32>
    %7 = arith.maximumf %3, %6 : vector<16x128xf32>
    %8 = arith.mulf %3, %5 : vector<16x128xf32>
    %9 = arith.subf %7, %8 : vector<16x128xf32>
    %10 = math.absf %3 : vector<16x128xf32>
    %cst_4 = arith.constant 0.000000e+00 : f32
    %11 = vector.broadcast %cst_4 : f32 to vector<16x128xf32>
    %12 = arith.subf %11, %10 : vector<16x128xf32>
    %13 = math.exp %12 : vector<16x128xf32>
    %14 = math.log1p %13 : vector<16x128xf32>
    %15 = arith.addf %9, %14 : vector<16x128xf32>
    %c0_5 = arith.constant 0 : index
    %c0_6 = arith.constant 0 : index
    %16 = vector.load %arg5[%c0_5, %c0_6] : memref<8x128xf32, #tpu.memory_space<vmem>>, vector<8x128xf32>
    %17 = vector.shape_cast %15 : vector<16x128xf32> to vector<2x8x128xf32>
    %cst_7 = arith.constant dense<0.000000e+00> : vector<8x128xf32>
    %18 = vector.multi_reduction <add>, %17, %cst_7 [0] : vector<2x8x128xf32> to vector<8x128xf32>
    %19 = arith.addf %16, %18 : vector<8x128xf32>
    %c0_8 = arith.constant 0 : index
    %c0_9 = arith.constant 0 : index
    %20 = vector.load %arg5[%c0_8, %c0_9] : memref<8x128xf32, #tpu.memory_space<vmem>>, vector<8x128xf32>
    tpu.vector_store %arg5[%c0_8, %c0_9], %19 {strides = array<i32>} : memref<8x128xf32, #tpu.memory_space<vmem>>, vector<8x128xf32>,
    %c0_i32_10 = arith.constant 0 : i32
    %21 = arith.cmpi eq, %arg1, %c0_i32_10 : i32
    %22 = arith.extui %21 : i1 to i32
    %c0_i32_11 = arith.constant 0 : i32
    %23 = arith.cmpi ne, %22, %c0_i32_11 : i32
    scf.if %23 {
      %c0_12 = arith.constant 0 : index
      %c0_13 = arith.constant 0 : index
      %24 = vector.load %arg5[%c0_12, %c0_13] : memref<8x128xf32, #tpu.memory_space<vmem>>, vector<8x128xf32>
      %25 = vector.shape_cast %24 : vector<8x128xf32> to vector<1x8x128xf32>
      %cst_14 = arith.constant dense<0.000000e+00> : vector<1xf32>
      %26 = vector.multi_reduction <add>, %25, %cst_14 [1, 2] : vector<1x8x128xf32> to vector<1xf32>
      %27 = vector.shape_cast %26 : vector<1xf32> to vector<1x1x1xf32>
      %28 = vector.extract %27[0, 0, 0] : f32 from vector<1x1x1xf32>
      %29 = vector.broadcast %28 : f32 to vector<1x1x1xf32>
      %c0_15 = arith.constant 0 : index
      %c0_16 = arith.constant 0 : index
      %c0_17 = arith.constant 0 : index
      %30 = vector.load %arg4[%c0_15, %c0_16, %c0_17] : memref<1x1x1xf32, #tpu.memory_space<vmem>>, vector<1x1x1xf32>
      tpu.vector_store %arg4[%c0_15, %c0_16, %c0_17], %29 {strides = array<i32>} : memref<1x1x1xf32, #tpu.memory_space<vmem>>, vector<1x1x1xf32>,
    } else {
    }
    return
  }
  func.func @transform_0(%arg0: i32, %arg1: i32) -> (i32, i32) {
    %c1_i32 = arith.constant 1 : i32
    %0 = arith.muli %arg0, %c1_i32 : i32
    %1 = arith.addi %0, %arg1 : i32
    %c0_i32 = arith.constant 0 : i32
    %c0_i32_0 = arith.constant 0 : i32
    return %1, %c0_i32 : i32, i32
  }
  func.func @transform_1(%arg0: i32, %arg1: i32) -> (i32, i32) {
    %c1_i32 = arith.constant 1 : i32
    %0 = arith.muli %arg0, %c1_i32 : i32
    %1 = arith.addi %0, %arg1 : i32
    %c0_i32 = arith.constant 0 : i32
    %c0_i32_0 = arith.constant 0 : i32
    return %1, %c0_i32 : i32, i32
  }
  func.func @transform_2(%arg0: i32, %arg1: i32) -> (i32, i32, i32) {
    %c0_i32 = arith.constant 0 : i32
    %c0_i32_0 = arith.constant 0 : i32
    %c0_i32_1 = arith.constant 0 : i32
    return %arg0, %c0_i32, %c0_i32_0 : i32, i32, i32
  }
}

</mosaic_0001>

<bundles_post_ra>
// kernel: tpu_custom_call.1
= control target key start
LH: loop header
LB: loop body
LE: loop exit
PB: predicated region body
PF: predicated region fallthrough
CT: control target
= control target key end

     0   :  { %7 = vsyncpa [#allocation4], 0  ;;  %s284_s0 = inlined_call_operand.hbm [shape: f32[16,128], index: 0, kind: input, shape index: {}]   ;;  %s285_s1 = inlined_call_operand.hbm [shape: bf16[16,128], index: 1, kind: input, shape index: {}]   ;;  %s286_s2 = inlined_call_operand.hbm [shape: f32[1,1,1], index: 2, kind: output, shape index: {}]  }
   0x1   :  { %8 = vsyncpa [#allocation7], 0 }
   0x2   :  { %9 = vsyncpa [#allocation5], 0  ;;  %s226_s9 = smov [#allocation3]   ;;  %s154_s13 = scalar_lea.hbm %s284_s0, 256 }
   0x3   :  { %s19_s10 = sshll.u32 %s226_s9, 4  ;;  %p155_p0 = scmp.ne.s32.totalorder %s284_s0, %s154_s13  ;;  %s20_s10 = int_to_ptr.vmem [resolvable:$true] %s19_s10 }
   0x4   :  { %p158_p1 = scmp.lt.u32.totalorder %s154_s13, %s284_s0 }
   0x6   :  { %p160_p2 = pnand %p158_p1, %p155_p0 }
   0x8   :  { %163 = shalt.err (!%p160_p2)
}
   0x9   :  { %s164_s18 = scalar_lea.vmem %s20_s10, 256  ;;  %p169_p4 = scmp.lt.s32.totalorder %s20_s10, %s20_s10 }
   0xa   :  { %p165_p3 = scmp.ne.s32.totalorder %s20_s10, %s164_s18  ;;  %p170_p5 = scmp.lt.s32.totalorder %s164_s18, %s164_s18 }
   0xc   :  { %p171_p6 = por %p170_p5, %p169_p4 }
   0xe   :  { %p172_p7 = pnand %p171_p6, %p165_p3 }
  0x10   :  { %175 = shalt.err (!%p172_p7)
}
  0x11   :  { %s227_s19 = smov 128   ;;  %s228_s20 = smov 8  }
  0x12   :  { %25 = dma.hbm_to_vmem [thread:$0]  %s284_s0, 256, %s20_s10, [#allocation4], %s227_s19, %s227_s19, %s228_s20  }
  0x13   :  { %s229_s23 = smov [#allocation6]   ;;  %s176_s27 = scalar_lea.hbm %s285_s1, 128 }
  0x14   :  { %s35_s24 = sshll.u32 %s229_s23, 4  ;;  %p177_p8 = scmp.ne.s32.totalorder %s285_s1, %s176_s27  ;;  %s36_s24 = int_to_ptr.vmem [resolvable:$true] %s35_s24 }
  0x15   :  { %p180_p9 = scmp.lt.u32.totalorder %s176_s27, %s285_s1 }
  0x17   :  { %p182_p10 = pnand %p180_p9, %p177_p8 }
  0x19   :  { %185 = shalt.err (!%p182_p10)
}
  0x1a   :  { %s186_s4 = scalar_lea.vmem %s36_s24, 128  ;;  %p191_p12 = scmp.lt.s32.totalorder %s36_s24, %s36_s24 }
  0x1b   :  { %p187_p11 = scmp.ne.s32.totalorder %s36_s24, %s186_s4  ;;  %p192_p13 = scmp.lt.s32.totalorder %s186_s4, %s186_s4 }
  0x1d   :  { %p193_p0 = por %p192_p13, %p191_p12 }
  0x1f   :  { %p194_p1 = pnand %p193_p0, %p187_p11 }
  0x21   :  { %197 = shalt.err (!%p194_p1)
}
  0x22   :  { %s230_s0 = smov 64   ;;  %s231_s5 = smov 4  }
  0x23   :  { %41 = dma.hbm_to_vmem [thread:$0]  %s285_s1, 128, %s36_s24, [#allocation7], %s230_s0, %s230_s0, %s231_s5  }
  0x24   :  { %220 = dma.done.wait [#allocation4], 256  }
  0x25   :  { %221 = vsyncadd [#allocation4], 4294967040 }
  0x26   :  { %222 = dma.done.wait [#allocation7], 128  }
  0x27   :  { %223 = vsyncadd [#allocation7], 4294967168  ;;  %v57_v0 = vld [vmem:[#allocation3] sm:$0xff]  ;;  %v58_v1 = vld [vmem:[#allocation3 + $0x8] sm:$0xff]  ;;  %s232_s1 = smov [#allocation8]   ;;  %vm115_vm2 = vcmask 0  }
  0x28   :  { %v69_v2 = vand.u32 2147483647, %v57_v0  ;;  %v70_v3 = vand.u32 2147483647, %v58_v1  ;;  %v134_v11 = vld [vmem:[#allocation6] sm:$0xff]   ;;  %v63_v18 = vmax.f32 %v57_v0, 0.0 }
  0x29   :  { %v135_v14 = vunpack.c.l.bf16 %v134_v11  ;;  %v136_v16 = vunpack.c.h.bf16 %v134_v11  ;;  %v64_v22 = vmax.f32 %v58_v1, 0.0  ;;  %s123_s8 = sshll.u32 %s232_s1, 4  ;;  %s124_s8 = int_to_ptr.vmem [resolvable:$true] %s123_s8 }
  0x2a   :  { %v71_v4 = vsub.f32 0.0, %v69_v2  ;;  %v72_v5 = vsub.f32 0.0, %v70_v3  ;;  %s198_s10 = scalar_lea.vmem %s124_s8, 16  ;;  %s202_s11 = scalar_lea.vmem %s124_s8, 32 }
  0x2b   :  { %v65_v19 = vmul.f32 %v135_v14, %v57_v0  ;;  %v66_v23 = vmul.f32 %v136_v16, %v58_v1  ;;  %p199_p2 = scmp.ne.s32.totalorder %s124_s8, %s198_s10  ;;  %p203_p3 = scmp.lt.s32.totalorder %s124_s8, %s124_s8 }
  0x2c   :  { %v73_v6 = vmul.f32 1.442695, %v71_v4  ;;  %v75_v7 = vmul.f32 1.442695, %v72_v5  ;;  %p204_p4 = scmp.lt.s32.totalorder %s202_s11, %s198_s10 }
  0x2d   :  { %v67_v27 = vsub.f32 %v63_v18, %v65_v19  ;;  %v68_v30 = vsub.f32 %v64_v22, %v66_v23 }
  0x2e   :  { %146 = vpow2.f32 %v73_v6  ;;  %p205_p5 = por %p204_p4, %p203_p3 }
  0x2f   :  { %148 = vpow2.f32 %v75_v7 }
  0x30   :  { %p206_p6 = pnand %p205_p5, %p199_p2 }
  0x38   :  { %v147_v8 = vpop.eup %146 }
  0x39   :  { %v149_v9 = vpop.eup %148  ;;  %v77_v10 = vadd.f32 1.0, %v147_v8  ;;  %v80_v13 = vmul.f32 -0.5, %v147_v8  ;;  %v83_v20 = vand.u32 2147483647, %v147_v8 }
  0x3a   :  { %v86_v12 = vadd.f32 1.0, %v149_v9  ;;  %v89_v15 = vmul.f32 -0.5, %v149_v9  ;;  %v92_v24 = vand.u32 2147483647, %v149_v9 }
  0x3b   :  { %150 = vlog2.f32 %v77_v10  ;;  %v81_v17 = vadd.f32 1.0, %v80_v13  ;;  %vm84_vm0 = vcmp.lt.f32.partialorder %v83_v20, 0.0004427343 }
  0x3c   :  { %152 = vlog2.f32 %v86_v12  ;;  %v90_v21 = vadd.f32 1.0, %v89_v15  ;;  %vm93_vm1 = vcmp.lt.f32.partialorder %v92_v24, 0.0004427343 }
  0x3d   :  { %v82_v25 = vmul.f32 %v147_v8, %v81_v17 }
  0x3e   :  { %v91_v28 = vmul.f32 %v149_v9, %v90_v21 }
  0x45   :  { %v151_v26 = vpop.eup %150 }
  0x46   :  { %v153_v29 = vpop.eup %152  ;;  %v79_v31 = vmul.f32 0.6931472, %v151_v26 }
  0x47   :  { %v88_v32 = vmul.f32 0.6931472, %v153_v29 }
  0x48   :  { %v85_v33 = vsel %vm84_vm0, %v82_v25, %v79_v31 }
  0x49   :  { %v94_v34 = vsel %vm93_vm1, %v91_v28, %v88_v32  ;;  %v95_v35 = vadd.f32 %v85_v33, %v67_v27 }
  0x4a   :  { %v96_v36 = vadd.f32 %v94_v34, %v68_v30 }
  0x4c   :  { %v98_v37 = vadd.f32 %v96_v36, %v95_v35 }
  0x4e   :  { %105 = vadd.xlane.f32.xlu0 %v98_v37 }
  0xdb   :  { %v106_v38 = vpop.xlane.xlu0 %105 }
  0xdc   :  { %v107_v39 = vrot.slane %v106_v38, 4 }
  0xde   :  { %v108_v40 = vadd.f32 %v107_v39, %v106_v38 }
  0xe0   :  { %v109_v41 = vrot.slane %v108_v40, 2 }
  0xe2   :  { %v110_v42 = vadd.f32 %v109_v41, %v108_v40 }
  0xe4   :  { %v111_v43 = vrot.slane %v110_v42, 1 }
  0xe6   :  { %v112_v44 = vadd.f32 %v111_v43, %v110_v42 }
  0xe8   :  { %137 = vpush %v112_v44 }
 0x119   :  { %s138_s9 = spop %137 }
 0x11a   :  { %v114_v45 = vstv %s138_s9 }
 0x11b   :  { %116 = vst.msk [vmem:[#allocation8] sm:$0x1] %vm115_vm2, %v114_v45 }
 0x11c   :  { %209 = shalt.err (!%p206_p6)
}
 0x11d   :  { %s210_s14 = scalar_lea.hbm %s286_s2, 16 }
 0x11e   :  { %p211_p7 = scmp.ne.s32.totalorder %s286_s2, %s210_s14  ;;  %p214_p8 = scmp.lt.u32.totalorder %s210_s14, %s286_s2 }
 0x120   :  { %p216_p9 = pnand %p214_p8, %p211_p7 }
 0x122   :  { %219 = shalt.err (!%p216_p9)
}
 0x123   :  { %126 = dma.vmem_to_hbm [thread:$0]  %s124_s8, 16, %s286_s2, [#allocation5]  }
 0x124   :  { %224 = dma.done.wait [#allocation5], 16  }
 0x125   :  { %225 = vsyncadd [#allocation5], 4294967280 }
 0x126   :  { %130 = vsyncpa [#allocation4], 1 }
 0x127   :  { %131 = vsyncpa [#allocation7], 1 }
 0x128   :  { %132 = vsyncpa [#allocation5], 1 }

</bundles_post_ra>
